<compile_context>
chip_gen: v7x
topology: tpu7x:2x2x1
jax: 0.10.0
libtpu: 0.0.40
codegen_flags: <defaults>
</compile_context>

<pallas_src>
import functools

import jax
import jax.numpy as jnp
from jax import lax
from jax.experimental import pallas as pl
from jax.experimental.pallas import tpu as pltpu

_VMEM_LIMIT = 48 * 1024 * 1024   # <= v7x physical 64 MiB VMEM per TensorCore
_PONG_STRIDES = (4, 2, 1)        # Conv2d strides of the ALE/Pong-v5 network


def _round_up(n, m):
    return ((n + m - 1) // m) * m


def _pad2d(a, rows, cols):
    r, c = a.shape
    if r == rows and c == cols:
        return a
    return jnp.pad(a, ((0, rows - r), (0, cols - c)))


# ---------------------------------------------------------------------------
# Pallas kernels
# ---------------------------------------------------------------------------
def _linear_kernel(x_ref, w_ref, b_ref, o_ref, *, relu):
    # bf16 x bf16 -> f32 accumulation on the MXU; bias / ReLU in f32.
    y = jnp.dot(x_ref[...], w_ref[...], preferred_element_type=jnp.float32)
    y = y + b_ref[...]
    if relu:
        y = jnp.maximum(y, 0.0)
    o_ref[...] = y.astype(o_ref.dtype)


def pallas_linear(x, w, b, *, relu=False, out_dtype=jnp.float32, block_m=512):
    """out = relu?(x @ w + b).  M-tiled grid, weight-resident, bf16 MXU inputs."""
    M, K = x.shape
    K2, N = w.shape
    assert K == K2
    Kp = _round_up(K, 128)                 # lane-dense K
    Np = _round_up(N, 128)                 # lane-dense (unmasked) output stores
    TM = min(block_m, _round_up(M, 16))    # 16-row aligned tiles (bf16 sublanes)
    Mp = _round_up(M, TM)

    xp = _pad2d(x, Mp, Kp).astype(jnp.bfloat16)
    wp = _pad2d(w, Kp, Np).astype(jnp.bfloat16)
    bp = _pad2d(b.astype(jnp.float32).reshape(1, N), 1, Np)

    out = pl.pallas_call(
        functools.partial(_linear_kernel, relu=relu),
        out_shape=jax.ShapeDtypeStruct((Mp, Np), out_dtype),
        grid=(Mp // TM,),
        in_specs=[
            pl.BlockSpec((TM, Kp), lambda i: (i, 0)),   # activation row tile
            pl.BlockSpec((Kp, Np), lambda i: (0, 0)),   # weight: VMEM-resident
            pl.BlockSpec((1, Np), lambda i: (0, 0)),    # bias:   VMEM-resident
        ],
        out_specs=pl.BlockSpec((TM, Np), lambda i: (i, 0)),
        compiler_params=pltpu.CompilerParams(
            dimension_semantics=("parallel",),
            vmem_limit_bytes=_VMEM_LIMIT),
        cost_estimate=pl.CostEstimate(
            flops=2 * Mp * Kp * Np,
            transcendentals=0,
            bytes_accessed=(Mp * Kp * 2 + Kp * Np * 2 + Np * 4
                            + Mp * Np * jnp.dtype(out_dtype).itemsize)),
    )(xp, wp, bp)
    return out[:M, :N]


def _fc_head_kernel(x_ref, w1_ref, b1_ref, w2_ref, b2_ref, o_ref):
    # Fused fc1(ReLU) + fc2: two MXU dots, one kernel launch, no HBM round-trip.
    h = jnp.dot(x_ref[...], w1_ref[...], preferred_element_type=jnp.float32)
    h = jnp.maximum(h + b1_ref[...], 0.0)
    y = jnp.dot(h.astype(w2_ref.dtype), w2_ref[...],
                preferred_element_type=jnp.float32)
    o_ref[...] = (y + b2_ref[...]).astype(o_ref.dtype)


def pallas_fc_head(x, w1, b1, w2, b2, *, block_m=512):
    M, K1 = x.shape
    _, H = w1.shape
    H2, N = w2.shape
    assert H == H2
    K1p = _round_up(K1, 128)
    Hp = _round_up(H, 128)
    Np = _round_up(N, 128)
    TM = min(block_m, _round_up(M, 16))
    Mp = _round_up(M, TM)

    xp = _pad2d(x, Mp, K1p).astype(jnp.bfloat16)
    w1p = _pad2d(w1, K1p, Hp).astype(jnp.bfloat16)
    b1p = _pad2d(b1.astype(jnp.float32).reshape(1, H), 1, Hp)
    w2p = _pad2d(w2, Hp, Np).astype(jnp.bfloat16)
    b2p = _pad2d(b2.astype(jnp.float32).reshape(1, N), 1, Np)

    out = pl.pallas_call(
        _fc_head_kernel,
        out_shape=jax.ShapeDtypeStruct((Mp, Np), jnp.float32),
        grid=(Mp // TM,),
        in_specs=[
            pl.BlockSpec((TM, K1p), lambda i: (i, 0)),  # batch row tile
            pl.BlockSpec((K1p, Hp), lambda i: (0, 0)),  # fc1 weight (resident)
            pl.BlockSpec((1, Hp), lambda i: (0, 0)),
            pl.BlockSpec((Hp, Np), lambda i: (0, 0)),   # fc2 weight (resident)
            pl.BlockSpec((1, Np), lambda i: (0, 0)),
        ],
        out_specs=pl.BlockSpec((TM, Np), lambda i: (i, 0)),
        compiler_params=pltpu.CompilerParams(
            dimension_semantics=("parallel",),
            vmem_limit_bytes=_VMEM_LIMIT),
        cost_estimate=pl.CostEstimate(
            flops=2 * Mp * (K1p * Hp + Hp * Np),
            transcendentals=0,
            bytes_accessed=(Mp * K1p * 2 + K1p * Hp * 2 + Hp * Np * 2
                            + (Hp + Np) * 4 + Mp * Np * 4)),
    )(xp, w1p, b1p, w2p, b2p)
    return out[:M, :N]


# ---------------------------------------------------------------------------
# CartPole branch: single fused f32 MLP kernel (B=2 -> launch-latency bound)
# ---------------------------------------------------------------------------
def _full_spec(shape):
    return pl.BlockSpec(shape, lambda i: (0,) * len(shape))


def _mlp_kernel(x_ref, w1_ref, b1_ref, w2_ref, b2_ref, w3_ref, b3_ref, o_ref):
    h = jnp.dot(x_ref[...], w1_ref[...], preferred_element_type=jnp.float32) + b1_ref[...]
    h = jnp.maximum(h, 0.0)
    h = jnp.dot(h, w2_ref[...], preferred_element_type=jnp.float32) + b2_ref[...]
    h = jnp.maximum(h, 0.0)
    o_ref[...] = jnp.dot(h, w3_ref[...], preferred_element_type=jnp.float32) + b3_ref[...]


@jax.jit
def cartpole_forward(x, params):
    """DQN('CartPole-v1'): Linear(4,128)-ReLU-Linear(128,128)-ReLU-Linear(128,A)."""
    (w1, b1), (w2, b2), (w3, b3) = params
    B = x.shape[0]
    A = w3.shape[1]
    return pl.pallas_call(
        _mlp_kernel,
        out_shape=jax.ShapeDtypeStruct((B, A), jnp.float32),
        grid=(1,),
        in_specs=[_full_spec(x.shape),
                  _full_spec(w1.shape), _full_spec((1, w1.shape[1])),
                  _full_spec(w2.shape), _full_spec((1, w2.shape[1])),
                  _full_spec(w3.shape), _full_spec((1, w3.shape[1]))],
        out_specs=_full_spec((B, A)),
        compiler_params=pltpu.CompilerParams(vmem_limit_bytes=_VMEM_LIMIT),
    )(x, w1, b1.reshape(1, -1), w2, b2.reshape(1, -1), w3, b3.reshape(1, -1))


# ---------------------------------------------------------------------------
# Pong CNN branch: NHWC end-to-end, convs lowered to im2col + Pallas matmul
# ---------------------------------------------------------------------------
@jax.jit
def pong_forward(x, conv_params, fc_params):
    """DQN('ALE/Pong-v5') forward.  x: (N, C, 84, 84) NCHW float32 (raw 0..255)."""
    scale = 1.0 / 255.0 if (x.ndim == 4 and x.shape[1:] == (4, 84, 84)) else 1.0
    # One NCHW->NHWC layout change at the input; activations stay NHWC + bf16
    # end-to-end, so no per-layer transposes are needed between convs.
    h = jnp.transpose(x, (0, 2, 3, 1)).astype(jnp.bfloat16)
    for idx, ((w, b), stride) in enumerate(zip(conv_params, _PONG_STRIDES)):
        O, C, kh, kw = w.shape
        # TODO(synk): patch extraction (im2col) is still an XLA op that
        # materializes the (N*Ho*Wo, C*kh*kw) matrix in HBM; a fully fused
        # in-kernel conv would remove that round trip.
        patches = lax.conv_general_dilated_patches(
            h, (kh, kw), (stride, stride), "VALID",
            dimension_numbers=("NHWC", "HWIO", "NHWC"))
        N, Ho, Wo, _ = patches.shape
        cols = patches.reshape(N * Ho * Wo, C * kh * kw)   # (C, kh, kw)-major
        wmat = w.reshape(O, C * kh * kw).T                 # matches OIHW flatten
        if idx == 0:
            wmat = wmat * scale                            # fold x/255 into conv1
        out = pallas_linear(cols, wmat, b, relu=True, out_dtype=jnp.bfloat16)
        h = out.reshape(N, Ho, Wo, O)                      # still NHWC
    N, Ho, Wo, O = h.shape
    flat = h.reshape(N, Ho * Wo * O)                       # NHWC flatten order
    (wf1, bf1), (wf2, bf2) = fc_params
    # Re-order fc1 *weight* rows once from torch's NCHW flatten order (c, h, w)
    # to our NHWC flatten order (h, w, c) -- cheaper than transposing activations.
    wf1_nhwc = wf1.reshape(O, Ho, Wo, -1).transpose(1, 2, 0, 3).reshape(O * Ho * Wo, -1)
    return pallas_fc_head(flat, wf1_nhwc, bf1, wf2, bf2)


# ---------------------------------------------------------------------------
# Deterministic parameter init (PyTorch-style fan-in uniform bounds)
# ---------------------------------------------------------------------------
def _init_linear(key, fan_in, fan_out):
    k1, k2 = jax.random.split(key)
    bound = 1.0 / float(fan_in) ** 0.5
    w = jax.random.uniform(k1, (fan_in, fan_out), jnp.float32, -bound, bound)
    b = jax.random.uniform(k2, (fan_out,), jnp.float32, -bound, bound)
    return w, b


def _init_conv(key, out_c, in_c, kh, kw):
    k1, k2 = jax.random.split(key)
    fan_in = in_c * kh * kw
    bound = 1.0 / float(fan_in) ** 0.5
    w = jax.random.uniform(k1, (out_c, in_c, kh, kw), jnp.float32, -bound, bound)
    b = jax.random.uniform(k2, (out_c,), jnp.float32, -bound, bound)
    return w, b


# ---------------------------------------------------------------------------
# Pure-JAX f32 references (sanity check only)
# ---------------------------------------------------------------------------
def _ref_cartpole(x, params):
    (w1, b1), (w2, b2), (w3, b3) = params
    h = jnp.maximum(jnp.dot(x, w1, precision="highest") + b1, 0.0)
    h = jnp.maximum(jnp.dot(h, w2, precision="highest") + b2, 0.0)
    return jnp.dot(h, w3, precision="highest") + b3


def _ref_pong(x, conv_params, fc_params):
    h = x / 255.0 if (x.ndim == 4 and x.shape[1:] == (4, 84, 84)) else x
    for (w, b), stride in zip(conv_params, _PONG_STRIDES):
        h = lax.conv_general_dilated(
            h, w, (stride, stride), "VALID",
            dimension_numbers=("NCHW", "OIHW", "NCHW"),
            precision=lax.Precision.HIGHEST)
        h = jnp.maximum(h + b.reshape(1, -1, 1, 1), 0.0)
    flat = h.reshape(h.shape[0], -1)
    (wf1, bf1), (wf2, bf2) = fc_params
    y = jnp.maximum(jnp.dot(flat, wf1, precision="highest") + bf1, 0.0)
    return jnp.dot(y, wf2, precision="highest") + bf2


# ---------------------------------------------------------------------------
if __name__ == "__main__":
    key = jax.random.PRNGKey(0)
    keys = jax.random.split(key, 12)

    # --------- CartPole-v1 variant: Linear(4,128)-ReLU-Linear(128,128)-ReLU-Linear(128,2)
    num_actions_cp = 2
    cp_params = [
        _init_linear(keys[0], 4, 128),
        _init_linear(keys[1], 128, 128),
        _init_linear(keys[2], 128, num_actions_cp),
    ]
    x_cp = jax.random.normal(keys[3], (2, 4), jnp.float32)
    q_cp = jax.block_until_ready(cartpole_forward(x_cp, cp_params))
    ref_cp = _ref_cartpole(x_cp, cp_params)
    assert q_cp.shape == (2, num_actions_cp)
    assert jnp.allclose(q_cp, ref_cp, rtol=2e-2, atol=2e-2)

    # --------- ALE/Pong-v5 variant: 3 convs + Flatten + 2 linears
    num_actions_pong = 6
    conv_params = [
        _init_conv(keys[4], 32, 4, 8, 8),    # Conv2d(4, 32, k=8, s=4)
        _init_conv(keys[5], 64, 32, 4, 4),   # Conv2d(32, 64, k=4, s=2)
        _init_conv(keys[6], 64, 64, 3, 3),   # Conv2d(64, 64, k=3, s=1)
    ]
    fc_params = [
        _init_linear(keys[7], 64 * 7 * 7, 512),
        _init_linear(keys[8], 512, num_actions_pong),
    ]
    x_pong = jax.random.uniform(keys[9], (2, 4, 84, 84), jnp.float32, 0.0, 255.0)
    q_pong = jax.block_until_ready(pong_forward(x_pong, conv_params, fc_params))
    ref_pong = _ref_pong(x_pong, conv_params, fc_params)
    assert q_pong.shape == (2, num_actions_pong)
    # bf16 MXU path vs f32-highest reference -> slightly looser tolerance
    assert jnp.allclose(q_pong, ref_pong, rtol=5e-2, atol=5e-2)

    print("KERNEL_OK")
</pallas_src>

<mosaic_0001>
module attributes {stable_mosaic.version = 11 : i64} {
  func.func @_mlp_kernel(%arg0: i32, %arg1: memref<2x4xf32, #tpu.memory_space<vmem>>, %arg2: memref<4x128xf32, #tpu.memory_space<vmem>>, %arg3: memref<1x128xf32, #tpu.memory_space<vmem>>, %arg4: memref<128x128xf32, #tpu.memory_space<vmem>>, %arg5: memref<1x128xf32, #tpu.memory_space<vmem>>, %arg6: memref<128x2xf32, #tpu.memory_space<vmem>>, %arg7: memref<1x2xf32, #tpu.memory_space<vmem>>, %arg8: memref<2x2xf32, #tpu.memory_space<vmem>>) attributes {dimension_semantics = [#tpu.dimension_semantics<arbitrary>], iteration_bounds = array<i64: 1>, scalar_prefetch = 0 : i64, scratch_operands = 0 : i64, tpu.core_type = #tpu.core_type<tc>, window_params = [{pipeline_mode = #tpu.pipeline_mode<synchronous>, transform_indices = @transform_0, window_bounds = array<i64: 2, 4>}, {pipeline_mode = #tpu.pipeline_mode<synchronous>, transform_indices = @transform_1, window_bounds = array<i64: 4, 128>}, {pipeline_mode = #tpu.pipeline_mode<synchronous>, transform_indices = @transform_2, window_bounds = array<i64: 1, 128>}, {pipeline_mode = #tpu.pipeline_mode<synchronous>, transform_indices = @transform_3, window_bounds = array<i64: 128, 128>}, {pipeline_mode = #tpu.pipeline_mode<synchronous>, transform_indices = @transform_4, window_bounds = array<i64: 1, 128>}, {pipeline_mode = #tpu.pipeline_mode<synchronous>, transform_indices = @transform_5, window_bounds = array<i64: 128, 2>}, {pipeline_mode = #tpu.pipeline_mode<synchronous>, transform_indices = @transform_6, window_bounds = array<i64: 1, 2>}, {pipeline_mode = #tpu.pipeline_mode<synchronous>, transform_indices = @transform_7, window_bounds = array<i64: 2, 2>}]} {
    %c0 = arith.constant 0 : index
    %c0_0 = arith.constant 0 : index
    %0 = vector.load %arg1[%c0, %c0_0] : memref<2x4xf32, #tpu.memory_space<vmem>>, vector<2x4xf32>
    %c0_1 = arith.constant 0 : index
    %c0_2 = arith.constant 0 : index
    %1 = vector.load %arg2[%c0_1, %c0_2] : memref<4x128xf32, #tpu.memory_space<vmem>>, vector<4x128xf32>
    %cst = arith.constant dense<0.000000e+00> : vector<2x128xf32>
    %2 = tpu.matmul %0, %1, %cst {dimension_numbers = #tpu.dot_dimension_numbers<[1], [0], [0], [1], [0, 0, 1, 1], [], []>} : vector<2x4xf32>, vector<4x128xf32>, vector<2x128xf32> -> vector<2x128xf32>
    %c0_3 = arith.constant 0 : index
    %c0_4 = arith.constant 0 : index
    %3 = vector.load %arg3[%c0_3, %c0_4] : memref<1x128xf32, #tpu.memory_space<vmem>>, vector<1x128xf32>
    %4 = vector.broadcast %3 : vector<1x128xf32> to vector<2x128xf32>
    %5 = arith.addf %2, %4 : vector<2x128xf32>
    %cst_5 = arith.constant 0.000000e+00 : f32
    %6 = vector.broadcast %cst_5 : f32 to vector<2x128xf32>
    %7 = arith.maximumf %5, %6 : vector<2x128xf32>
    %c0_6 = arith.constant 0 : index
    %c0_7 = arith.constant 0 : index
    %8 = vector.load %arg4[%c0_6, %c0_7] : memref<128x128xf32, #tpu.memory_space<vmem>>, vector<128x128xf32>
    %cst_8 = arith.constant dense<0.000000e+00> : vector<2x128xf32>
    %9 = tpu.matmul %7, %8, %cst_8 {dimension_numbers = #tpu.dot_dimension_numbers<[1], [0], [0], [1], [0, 0, 1, 1], [], []>} : vector<2x128xf32>, vector<128x128xf32>, vector<2x128xf32> -> vector<2x128xf32>
    %c0_9 = arith.constant 0 : index
    %c0_10 = arith.constant 0 : index
    %10 = vector.load %arg5[%c0_9, %c0_10] : memref<1x128xf32, #tpu.memory_space<vmem>>, vector<1x128xf32>
    %11 = vector.broadcast %10 : vector<1x128xf32> to vector<2x128xf32>
    %12 = arith.addf %9, %11 : vector<2x128xf32>
    %cst_11 = arith.constant 0.000000e+00 : f32
    %13 = vector.broadcast %cst_11 : f32 to vector<2x128xf32>
    %14 = arith.maximumf %12, %13 : vector<2x128xf32>
    %c0_12 = arith.constant 0 : index
    %c0_13 = arith.constant 0 : index
    %15 = vector.load %arg6[%c0_12, %c0_13] : memref<128x2xf32, #tpu.memory_space<vmem>>, vector<128x2xf32>
    %cst_14 = arith.constant dense<0.000000e+00> : vector<2x2xf32>
    %16 = tpu.matmul %14, %15, %cst_14 {dimension_numbers = #tpu.dot_dimension_numbers<[1], [0], [0], [1], [0, 0, 1, 1], [], []>} : vector<2x128xf32>, vector<128x2xf32>, vector<2x2xf32> -> vector<2x2xf32>
    %c0_15 = arith.constant 0 : index
    %c0_16 = arith.constant 0 : index
    %17 = vector.load %arg7[%c0_15, %c0_16] : memref<1x2xf32, #tpu.memory_space<vmem>>, vector<1x2xf32>
    %18 = vector.broadcast %17 : vector<1x2xf32> to vector<2x2xf32>
    %19 = arith.addf %16, %18 : vector<2x2xf32>
    %c0_17 = arith.constant 0 : index
    %c0_18 = arith.constant 0 : index
    %20 = vector.load %arg8[%c0_17, %c0_18] : memref<2x2xf32, #tpu.memory_space<vmem>>, vector<2x2xf32>
    tpu.vector_store %arg8[%c0_17, %c0_18], %19 {strides = array<i32>} : memref<2x2xf32, #tpu.memory_space<vmem>>, vector<2x2xf32>,
    return
  }
  func.func @transform_0(%arg0: i32) -> (i32, i32) {
    %c0_i32 = arith.constant 0 : i32
    %c0_i32_0 = arith.constant 0 : i32
    %c0_i32_1 = arith.constant 0 : i32
    return %c0_i32, %c0_i32_0 : i32, i32
  }
  func.func @transform_1(%arg0: i32) -> (i32, i32) {
    %c0_i32 = arith.constant 0 : i32
    %c0_i32_0 = arith.constant 0 : i32
    %c0_i32_1 = arith.constant 0 : i32
    return %c0_i32, %c0_i32_0 : i32, i32
  }
  func.func @transform_2(%arg0: i32) -> (i32, i32) {
    %c0_i32 = arith.constant 0 : i32
    %c0_i32_0 = arith.constant 0 : i32
    %c0_i32_1 = arith.constant 0 : i32
    return %c0_i32, %c0_i32_0 : i32, i32
  }
  func.func @transform_3(%arg0: i32) -> (i32, i32) {
    %c0_i32 = arith.constant 0 : i32
    %c0_i32_0 = arith.constant 0 : i32
    %c0_i32_1 = arith.constant 0 : i32
    return %c0_i32, %c0_i32_0 : i32, i32
  }
  func.func @transform_4(%arg0: i32) -> (i32, i32) {
    %c0_i32 = arith.constant 0 : i32
    %c0_i32_0 = arith.constant 0 : i32
    %c0_i32_1 = arith.constant 0 : i32
    return %c0_i32, %c0_i32_0 : i32, i32
  }
  func.func @transform_5(%arg0: i32) -> (i32, i32) {
    %c0_i32 = arith.constant 0 : i32
    %c0_i32_0 = arith.constant 0 : i32
    %c0_i32_1 = arith.constant 0 : i32
    return %c0_i32, %c0_i32_0 : i32, i32
  }
  func.func @transform_6(%arg0: i32) -> (i32, i32) {
    %c0_i32 = arith.constant 0 : i32
    %c0_i32_0 = arith.constant 0 : i32
    %c0_i32_1 = arith.constant 0 : i32
    return %c0_i32, %c0_i32_0 : i32, i32
  }
  func.func @transform_7(%arg0: i32) -> (i32, i32) {
    %c0_i32 = arith.constant 0 : i32
    %c0_i32_0 = arith.constant 0 : i32
    %c0_i32_1 = arith.constant 0 : i32
    return %c0_i32, %c0_i32_0 : i32, i32
  }
}

</mosaic_0001>

<bundles_post_ra>
// kernel: cartpole_forward.1
= control target key start
LH: loop header
LB: loop body
LE: loop exit
PB: predicated region body
PF: predicated region fallthrough
CT: control target
= control target key end

     0   :  { %vm40_vm0 = vcmask 1043456   ;;  %vm36_vm1 = vcmask 31744   ;;  %v510_v1 = vmov 0.0   ;;  %vm511_vm2 = vmmov 0   ;;  %s696_s0 = inlined_call_operand.vmem [shape: f32[2,4], index: 0, kind: input, shape index: {}]   ;;  %s697_s1 = inlined_call_operand.vmem [shape: f32[4,128], index: 1, kind: input, shape index: {}]   ;;  %s698_s2 = inlined_call_operand.vmem [shape: f32[1,128], index: 2, kind: input, shape index: {}]   ;;  %s699_s3 = inlined_call_operand.vmem [shape: f32[128,128], index: 3, kind: input, shape index: {}]   ;;  %s700_s4 = inlined_call_operand.vmem [shape: f32[1,128], index: 4, kind: input, shape index: {}]   ;;  %s701_s5 = inlined_call_operand.vmem [shape: f32[128,2], index: 5, kind: input, shape index: {}]   ;;  %s702_s6 = inlined_call_operand.vmem [shape: f32[1,2], index: 6, kind: input, shape index: {}]   ;;  %s703_s7 = inlined_call_operand.hbm [shape: f32[2,2], index: 7, kind: output, shape index: {}]  }
   0x1   :  { %v28_v0 = vld [vmem:[%s697_s1] sm:$0xf]  ;;  %359 = vmatprep.subr.mxu0 %v510_v1  ;;  %361 = vmatprep.mubr.msk.f32.mxu0 %vm511_vm2, %v510_v1  ;;  %v116_v4 = vld [vmem:[%s699_s3 + $0x8] sm:$0xff]  ;;  %v512_v5 = vmov 0.0|0.0   ;;  %v117_v7 = vld [vmem:[%s699_s3 + $0x10] sm:$0xff] }
   0x2   :  { %v27_v2 = vld [vmem:[%s696_s0] sm:$0x3]  ;;  %360 = vmatpush3.msk.msra.mxu0 %vm40_vm0, %v28_v0  ;;  %434 = vmatprep.subr.bf16.mxu1 %v512_v5  ;;  %v118_v8 = vld [vmem:[%s699_s3 + $0x18] sm:$0xff]  ;;  %v120_v11 = vld [vmem:[%s699_s3 + $0x28] sm:$0xff] }
   0x3   :  { %v115_v3 = vld [vmem:[%s699_s3] sm:$0xff]  ;;  %362 = vmatmul.mubr.msk.f32.vlgmr.msra.gmra.mrb[0].mxu0 %vm36_vm1, %v27_v2  ;;  %396 = vmatprep.mubr.msk.f32.mxu1 %vm511_vm2, %v510_v1  ;;  %v438_v9 = vpack.c.bf16 %v118_v8, %v117_v7 }
   0x4   :  { %v435_v6 = vpack.c.bf16 %v116_v4, %v115_v3  ;;  %458 = vmatprep.subr.bf16.mxu0 %v512_v5  ;;  %v119_v10 = vld [vmem:[%s699_s3 + $0x20] sm:$0xff]  ;;  %431 = vmatprep.mubr.msk.f32.mxu0 %vm511_vm2, %v510_v1 }
   0x6   :  { %436 = vmatpush3.bf16.msra.mxu1 %v435_v6 }
   0x7   :  { %437 = vmatprep.subr.bf16.mxu1 %v512_v5 }
   0x8   :  { %12 = vsyncpa [#allocation3], 0  ;;  %v441_v12 = vpack.c.bf16 %v120_v11, %v119_v10  ;;  %v121_v13 = vld [vmem:[%s699_s3 + $0x30] sm:$0xff]  ;;  %v122_v14 = vld [vmem:[%s699_s3 + $0x38] sm:$0xff]  ;;  %s513_s20 = smov [#allocation2]   ;;  %vm302_vm3 = vcmask 9216  }
   0x9   :  { %v444_v15 = vpack.c.bf16 %v122_v14, %v121_v13  ;;  %v123_v16 = vld [vmem:[%s699_s3 + $0x40] sm:$0xff]  ;;  %v124_v17 = vld [vmem:[%s699_s3 + $0x48] sm:$0xff]  ;;  %v125_v19 = vld [vmem:[%s699_s3 + $0x50] sm:$0xff]  ;;  %s310_s21 = sshll.u32 %s513_s20, 4  ;;  %s311_s21 = int_to_ptr.vmem [resolvable:$true] %s310_s21 }
   0xa   :  { %439 = vmatpush3.bf16.msra.mxu1 %v438_v9  ;;  %v447_v18 = vpack.c.bf16 %v124_v17, %v123_v16  ;;  %v126_v20 = vld [vmem:[%s699_s3 + $0x58] sm:$0xff]  ;;  %v127_v22 = vld [vmem:[%s699_s3 + $0x60] sm:$0xff]  ;;  %v128_v23 = vld [vmem:[%s699_s3 + $0x68] sm:$0xff]  ;;  %p491_p1 = scmp.lt.s32.totalorder %s311_s21, %s311_s21 }
   0xb   :  { %440 = vmatprep.subr.bf16.mxu1 %v512_v5  ;;  %v450_v21 = vpack.c.bf16 %v126_v20, %v125_v19  ;;  %v453_v24 = vpack.c.bf16 %v128_v23, %v127_v22  ;;  %v129_v25 = vld [vmem:[%s699_s3 + $0x70] sm:$0xff]  ;;  %v130_v26 = vld [vmem:[%s699_s3 + $0x78] sm:$0xff]  ;;  %v209_v28 = vld [vmem:[%s701_s5] sm:$0xff] }
   0xc   :  { %v456_v27 = vpack.c.bf16 %v130_v26, %v129_v25  ;;  %v210_v29 = vld [vmem:[%s701_s5 + $0x8] sm:$0xff]  ;;  %v211_v30 = vld [vmem:[%s701_s5 + $0x10] sm:$0xff]  ;;  %v212_v32 = vld [vmem:[%s701_s5 + $0x18] sm:$0xff] }
   0xd   :  { %v459_v31 = vpack.c.bf16 %v210_v29, %v209_v28  ;;  %v462_v33 = vpack.c.bf16 %v212_v32, %v211_v30  ;;  %v213_v34 = vld [vmem:[%s701_s5 + $0x20] sm:$0xff]  ;;  %v214_v35 = vld [vmem:[%s701_s5 + $0x28] sm:$0xff]  ;;  %v215_v37 = vld [vmem:[%s701_s5 + $0x30] sm:$0xff] }
   0xe   :  { %442 = vmatpush3.bf16.msra.mxu1 %v441_v12  ;;  %v465_v36 = vpack.c.bf16 %v214_v35, %v213_v34  ;;  %v216_v38 = vld [vmem:[%s701_s5 + $0x38] sm:$0xff]  ;;  %v217_v40 = vld [vmem:[%s701_s5 + $0x40] sm:$0xff]  ;;  %v218_v41 = vld [vmem:[%s701_s5 + $0x48] sm:$0xff] }
   0xf   :  { %443 = vmatprep.subr.bf16.mxu1 %v512_v5  ;;  %460 = vmatpush3.bf16.msra.mxu0 %v459_v31  ;;  %v468_v39 = vpack.c.bf16 %v216_v38, %v215_v37  ;;  %v471_v42 = vpack.c.bf16 %v218_v41, %v217_v40  ;;  %v219_v43 = vld [vmem:[%s701_s5 + $0x50] sm:$0xff]  ;;  %v220_v44 = vld [vmem:[%s701_s5 + $0x58] sm:$0xff]  ;;  %v221_v46 = vld [vmem:[%s701_s5 + $0x60] sm:$0xff] }
  0x10   :  { %461 = vmatprep.subr.bf16.mxu0 %v512_v5  ;;  %v474_v45 = vpack.c.bf16 %v220_v44, %v219_v43  ;;  %v222_v47 = vld [vmem:[%s701_s5 + $0x68] sm:$0xff]  ;;  %v318_v49 = vld [vmem:[%s698_s2] ss:$0 sm:$0xff]  ;;  %v223_v54 = vld [vmem:[%s701_s5 + $0x70] sm:$0xff] }
  0x11   :  { %v477_v48 = vpack.c.bf16 %v222_v47, %v221_v46  ;;  %v224_v55 = vld [vmem:[%s701_s5 + $0x78] sm:$0xff]  ;;  %v321_v57 = vld [vmem:[%s700_s4] ss:$0 sm:$0xff]  ;;  %s486_s5 = scalar_lea.vmem %s311_s21, 32 }
  0x12   :  { %445 = vmatpush3.bf16.msra.mxu1 %v444_v15  ;;  %v480_v56 = vpack.c.bf16 %v224_v55, %v223_v54  ;;  %v322_v62 = vld [vmem:[%s702_s6] ss:$0 sm:$0xff]  ;;  %p487_p0 = scmp.ne.s32.totalorder %s311_s21, %s486_s5  ;;  %p492_p2 = scmp.lt.s32.totalorder %s486_s5, %s486_s5 }
  0x13   :  { %446 = vmatprep.subr.bf16.mxu1 %v512_v5  ;;  %463 = vmatpush3.bf16.msra.mxu0 %v462_v33 }
  0x14   :  { %464 = vmatprep.subr.bf16.mxu0 %v512_v5  ;;  %p493_p3 = por %p492_p2, %p491_p1 }
  0x16   :  { %448 = vmatpush3.bf16.msra.mxu1 %v447_v18  ;;  %p494_p4 = pnand %p493_p3, %p487_p0 }
  0x17   :  { %449 = vmatprep.subr.bf16.mxu1 %v512_v5  ;;  %466 = vmatpush3.bf16.msra.mxu0 %v465_v36 }
  0x18   :  { %467 = vmatprep.subr.bf16.mxu0 %v512_v5 }
  0x1a   :  { %451 = vmatpush3.bf16.msra.mxu1 %v450_v21 }
  0x1b   :  { %452 = vmatprep.subr.bf16.mxu1 %v512_v5  ;;  %469 = vmatpush3.bf16.msra.mxu0 %v468_v39 }
  0x1c   :  { %470 = vmatprep.subr.bf16.mxu0 %v512_v5 }
  0x1e   :  { %454 = vmatpush3.bf16.msra.mxu1 %v453_v24 }
  0x1f   :  { %455 = vmatprep.subr.bf16.mxu1 %v512_v5  ;;  %472 = vmatpush3.bf16.msra.mxu0 %v471_v42 }
  0x20   :  { %473 = vmatprep.subr.bf16.mxu0 %v512_v5 }
  0x22   :  { %457 = vmatpush3.bf16.msra.mxu1 %v456_v27 }
  0x23   :  { %475 = vmatpush3.bf16.msra.mxu0 %v474_v45 }
  0x24   :  { %476 = vmatprep.subr.bf16.mxu0 %v512_v5 }
  0x27   :  { %478 = vmatpush3.bf16.msra.mxu0 %v477_v48 }
  0x28   :  { %479 = vmatprep.subr.bf16.mxu0 %v512_v5 }
  0x2b   :  { %481 = vmatpush3.bf16.msra.mxu0 %v480_v56 }
  0xd6   :  { %v110_v50 = vpop.f32.mrb[0].mxu0 }
  0xd7   :  { %v111_v51 = vadd.f32 %v318_v49, %v110_v50  ;;  %v363_v52 = vpop.f32.mrb[1].mxu0 }
  0xd9   :  { %v114_v53 = vmax.f32 %v111_v51, 0.0 }
  0xdb   :  { %397 = vmatmul.mubr.f32.vlgmr.msra.gmra.mrb[0].mxu1 %v114_v53 }
 0x1ae   :  { %v204_v58 = vpop.f32.mrb[0].mxu1 }
 0x1af   :  { %v205_v59 = vadd.f32 %v321_v57, %v204_v58  ;;  %v398_v60 = vpop.f32.mrb[1].mxu1 }
 0x1b1   :  { %v208_v61 = vmax.f32 %v205_v59, 0.0 }
 0x1b3   :  { %432 = vmatmul.mubr.f32.vlgmr.msra.gmra.mrb[2].mxu0 %v208_v61 }
 0x286   :  { %v298_v63 = vpop.f32.mrb[2].mxu0 }
 0x287   :  { %v299_v0 = vadd.f32 %v322_v62, %v298_v63  ;;  %v433_v1 = vpop.f32.mrb[3].mxu0 }
 0x289   :  { %303 = vst.msk [vmem:[#allocation2] sm:$0x3] %vm302_vm3, %v299_v0 }
 0x28a   :  { %497 = shalt.err (!%p494_p4)
}
 0x28b   :  { %s498_s23 = scalar_lea.hbm %s703_s7, 32 }
 0x28c   :  { %p499_p5 = scmp.ne.s32.totalorder %s703_s7, %s498_s23  ;;  %p502_p6 = scmp.lt.u32.totalorder %s498_s23, %s703_s7 }
 0x28e   :  { %p504_p7 = pnand %p502_p6, %p499_p5 }
 0x290   :  { %507 = shalt.err (!%p504_p7)
}
 0x291   :  { %313 = dma.vmem_to_hbm [thread:$0]  %s311_s21, 32, %s703_s7, [#allocation3]  }
 0x292   :  { %508 = dma.done.wait [#allocation3], 32  }
 0x293   :  { %509 = vsyncadd [#allocation3], 4294967264 }
 0x294   :  { %317 = vsyncpa [#allocation3], 1 }

</bundles_post_ra>
